<compile_context>
chip_gen: v6e
topology: v6e:2x2x1
jax: 0.10.0
libtpu: 0.0.40
codegen_flags: <defaults>
</compile_context>

<pallas_src>
import functools

import jax
import jax.numpy as jnp
from jax.experimental import pallas as pl
from jax.experimental.pallas import tpu as pltpu


def _tdam_kernel(x_ref, o_ref, *, inv_hw, inv_n, var1, var2, e_lambda):
    # x_ref / o_ref: (rows, HW) tile. Each row is an independent (b, c) pair.
    x = x_ref[...].astype(jnp.float32)                        # upcast in VMEM only
    mu = jnp.sum(x, axis=-1, keepdims=True) * inv_hw          # (rows, 1)
    d = x - mu
    s = jnp.sum(d * d, axis=-1, keepdims=True)                # (rows, 1)
    inv = 1.0 / (var1 * (s * inv_n + e_lambda))               # (rows, 1), tiny
    y = (d * d) * inv + var2                                  # d*d recomputed (free VPU filler)
    o_ref[...] = (x * jax.nn.sigmoid(y)).astype(o_ref.dtype)


def _choose_row_tile(rows, hw, itemsize):
    """Row-tile: multiple of the sublane packing, ~1 MiB of input per block,
    and >= ~8 grid steps when there is enough work."""
    sub = max(8, 32 // itemsize)          # 8 (f32), 16 (bf16/f16), 32 (int8)
    if rows <= sub:
        return rows                        # full-dim block (allowed even if < 8)
    row_bytes = max(hw * itemsize, 1)
    target_bytes = 1 << 20                 # ~1 MiB input per block
    tr = max(sub, (target_bytes // row_bytes) // sub * sub)
    if rows // tr < 8:                     # keep several steps for pipelining / megacore
        tr = max(sub, (rows // 8) // sub * sub)
    return min(tr, (rows // sub) * sub)


def tdam(x, e_lambda=1e-5, var1=8, var2=0.6):
    """x: (N, C, H, W), any float dtype. Returns same shape/dtype."""
    N, C, H, W = x.shape
    HW = H * W
    rows = N * C
    x2 = x.reshape(rows, HW)               # lane-dense last dim, row = (b, c)

    tr = _choose_row_tile(rows, HW, x.dtype.itemsize)
    grid = (pl.cdiv(rows, tr),)

    n = max(HW - 1, 1)                     # guard HW == 1 (reference divides by zero)
    kernel = functools.partial(
        _tdam_kernel,
        inv_hw=1.0 / HW, inv_n=1.0 / n,
        var1=float(var1), var2=float(var2), e_lambda=float(e_lambda))

    out = pl.pallas_call(
        kernel,
        out_shape=jax.ShapeDtypeStruct((rows, HW), x.dtype),
        grid=grid,
        in_specs=[pl.BlockSpec((tr, HW), lambda i: (i, 0))],
        out_specs=pl.BlockSpec((tr, HW), lambda i: (i, 0)),
        compiler_params=pltpu.CompilerParams(
            dimension_semantics=("parallel",)),
    )(x2)
    return out.reshape(N, C, H, W)


def _reference(x, e_lambda=1e-5, var1=8, var2=0.6):
    b, c, h, w = x.shape
    n = w * h - 1
    mu = jnp.mean(x, axis=(2, 3), keepdims=True)
    d2 = (x - mu) ** 2
    y = d2 / (var1 * (jnp.sum(d2, axis=(2, 3), keepdims=True) / n + e_lambda)) + var2
    return x * jax.nn.sigmoid(y)


if __name__ == "__main__":
    key = jax.random.PRNGKey(0)

    # Primary test shape (matches the module's intended use).
    N, C, H, W = 2, 4, 16, 16
    x = jax.random.normal(key, (N, C, H, W), dtype=jnp.float32)

    out = tdam(x)
    out = jax.block_until_ready(out)

    ref = _reference(x)
    assert out.shape == (N, C, H, W)
    assert out.dtype == x.dtype
    assert jnp.allclose(out, ref, atol=1e-5, rtol=1e-5), "mismatch vs reference"

    # Secondary check: row count not a multiple of the tile (exercises the
    # padded/ragged last grid block with the cdiv-based tiling).
    k2 = jax.random.PRNGKey(1)
    x2 = jax.random.normal(k2, (3, 5, 16, 8), dtype=jnp.float32)
    out2 = jax.block_until_ready(tdam(x2))
    ref2 = _reference(x2)
    assert jnp.allclose(out2, ref2, atol=1e-5, rtol=1e-5), "mismatch (ragged grid)"

    print("KERNEL_OK")
</pallas_src>

<mosaic_0001>
module attributes {stable_mosaic.version = 11 : i64} {
  func.func @_tdam_kernel(%arg0: i32, %arg1: memref<8x256xf32, #tpu.memory_space<vmem>>, %arg2: memref<8x256xf32, #tpu.memory_space<vmem>>) attributes {dimension_semantics = [#tpu.dimension_semantics<parallel>], iteration_bounds = array<i64: 1>, scalar_prefetch = 0 : i64, scratch_operands = 0 : i64, tpu.core_type = #tpu.core_type<tc>, window_params = [{transform_indices = @transform_0, window_bounds = array<i64: 8, 256>}, {transform_indices = @transform_1, window_bounds = array<i64: 8, 256>}]} {
    %c0 = arith.constant 0 : index
    %c0_0 = arith.constant 0 : index
    %0 = vector.load %arg1[%c0, %c0_0] : memref<8x256xf32, #tpu.memory_space<vmem>>, vector<8x256xf32>
    %cst = arith.constant dense<0.000000e+00> : vector<8xf32>
    %1 = vector.multi_reduction <add>, %0, %cst [1] : vector<8x256xf32> to vector<8xf32>
    %2 = vector.shape_cast %1 : vector<8xf32> to vector<8x1xf32>
    %cst_1 = arith.constant 3.906250e-03 : f32
    %3 = vector.broadcast %cst_1 : f32 to vector<8x1xf32>
    %4 = arith.mulf %2, %3 : vector<8x1xf32>
    %5 = vector.broadcast %4 : vector<8x1xf32> to vector<8x256xf32>
    %6 = arith.subf %0, %5 : vector<8x256xf32>
    %7 = arith.mulf %6, %6 : vector<8x256xf32>
    %cst_2 = arith.constant dense<0.000000e+00> : vector<8xf32>
    %8 = vector.multi_reduction <add>, %7, %cst_2 [1] : vector<8x256xf32> to vector<8xf32>
    %9 = vector.shape_cast %8 : vector<8xf32> to vector<8x1xf32>
    %cst_3 = arith.constant 0.00392156886 : f32
    %10 = vector.broadcast %cst_3 : f32 to vector<8x1xf32>
    %11 = arith.mulf %9, %10 : vector<8x1xf32>
    %cst_4 = arith.constant 9.99999974E-6 : f32
    %12 = vector.broadcast %cst_4 : f32 to vector<8x1xf32>
    %13 = arith.addf %11, %12 : vector<8x1xf32>
    %cst_5 = arith.constant 8.000000e+00 : f32
    %14 = vector.broadcast %cst_5 : f32 to vector<8x1xf32>
    %15 = arith.mulf %14, %13 : vector<8x1xf32>
    %cst_6 = arith.constant 1.000000e+00 : f32
    %16 = vector.broadcast %cst_6 : f32 to vector<8x1xf32>
    %17 = arith.divf %16, %15 : vector<8x1xf32>
    %18 = arith.mulf %6, %6 : vector<8x256xf32>
    %19 = vector.broadcast %17 : vector<8x1xf32> to vector<8x256xf32>
    %20 = arith.mulf %18, %19 : vector<8x256xf32>
    %cst_7 = arith.constant 6.000000e-01 : f32
    %21 = vector.broadcast %cst_7 : f32 to vector<8x256xf32>
    %22 = arith.addf %20, %21 : vector<8x256xf32>
    %23 = arith.negf %22 : vector<8x256xf32>
    %24 = math.exp %23 : vector<8x256xf32>
    %cst_8 = arith.constant 1.000000e+00 : f32
    %25 = vector.broadcast %cst_8 : f32 to vector<8x256xf32>
    %26 = arith.addf %25, %24 : vector<8x256xf32>
    %27 = arith.divf %25, %26 : vector<8x256xf32>
    %28 = arith.mulf %0, %27 : vector<8x256xf32>
    %c0_9 = arith.constant 0 : index
    %c0_10 = arith.constant 0 : index
    %29 = vector.load %arg2[%c0_9, %c0_10] : memref<8x256xf32, #tpu.memory_space<vmem>>, vector<8x256xf32>
    tpu.vector_store %arg2[%c0_9, %c0_10], %28 {strides = array<i32>} : memref<8x256xf32, #tpu.memory_space<vmem>>, vector<8x256xf32>,
    return
  }
  func.func @transform_0(%arg0: i32) -> (i32, i32) {
    %c0_i32 = arith.constant 0 : i32
    %c0_i32_0 = arith.constant 0 : i32
    return %arg0, %c0_i32 : i32, i32
  }
  func.func @transform_1(%arg0: i32) -> (i32, i32) {
    %c0_i32 = arith.constant 0 : i32
    %c0_i32_0 = arith.constant 0 : i32
    return %arg0, %c0_i32 : i32, i32
  }
}

</mosaic_0001>

<bundles_post_ra>
// kernel: tpu_custom_call.1
= control target key start
LH: loop header
LB: loop body
LE: loop exit
PB: predicated region body
PF: predicated region fallthrough
CT: control target
= control target key end

     0   :  { %6 = vsyncpa [#allocation3], 0  ;;  %s150_s0 = inlined_call_operand.hbm [shape: f32[8,256], index: 0, kind: input, shape index: {}]   ;;  %s151_s1 = inlined_call_operand.hbm [shape: f32[8,256], index: 1, kind: output, shape index: {}]  }
   0x1   :  { %7 = vsyncpa [#allocation4], 0  ;;  %s132_s6 = smov [#allocation2]  }
   0x2   :  { %s14_s7 = sshll.u32 %s132_s6, 4  ;;  %s15_s7 = int_to_ptr.vmem [resolvable:$true] %s14_s7 }
   0x3   :  { %s96_s8 = scalar_lea.vmem %s15_s7, 256  ;;  %p101_p1 = scmp.lt.s32.totalorder %s15_s7, %s15_s7 }
   0x4   :  { %p97_p0 = scmp.ne.s32.totalorder %s15_s7, %s96_s8  ;;  %p102_p2 = scmp.lt.s32.totalorder %s96_s8, %s96_s8 }
   0x6   :  { %p103_p3 = por %p102_p2, %p101_p1 }
   0x8   :  { %p104_p4 = pnand %p103_p3, %p97_p0 }
   0xa   :  { %107 = shalt.err (!%p104_p4)
}
   0xb   :  { %17 = dma.hbm_to_vmem [thread:$0]  %s150_s0, 256, %s15_s7, [#allocation3]  }
   0xc   :  { %128 = dma.done.wait [#allocation3], 256  }
   0xd   :  { %129 = vsyncadd [#allocation3], 4294967040  ;;  %v21_v0 = vld [vmem:[#allocation2] sm:$0xff]  ;;  %v22_v1 = vld [vmem:[#allocation2 + $0x8] sm:$0xff]  ;;  %s133_s0 = smov [#allocation5]  }
   0xe   :  { %v23_v2 = vadd.f32 %v22_v1, %v21_v0  ;;  %s65_s11 = sshll.u32 %s133_s0, 4  ;;  %s66_s11 = int_to_ptr.vmem [resolvable:$true] %s65_s11 }
   0xf   :  { %s108_s12 = scalar_lea.vmem %s66_s11, 256  ;;  %p113_p6 = scmp.lt.s32.totalorder %s66_s11, %s66_s11 }
  0x10   :  { %24 = vadd.xlane.f32.xlu0 %v23_v2  ;;  %p109_p5 = scmp.ne.s32.totalorder %s66_s11, %s108_s12  ;;  %p114_p7 = scmp.lt.s32.totalorder %s108_s12, %s108_s12 }
  0x12   :  { %p115_p8 = por %p114_p7, %p113_p6 }
  0x14   :  { %p116_p9 = pnand %p115_p8, %p109_p5 }
  0x99   :  { %v25_v3 = vpop.xlane.xlu0 %24 }
  0x9a   :  { %v26_v4 = vmul.f32 0.00390625, %v25_v3 }
  0x9c   :  { %v27_v5 = vsub.f32 %v21_v0, %v26_v4  ;;  %v28_v6 = vsub.f32 %v22_v1, %v26_v4 }
  0x9e   :  { %v29_v7 = vmul.f32 %v27_v5, %v27_v5  ;;  %v30_v8 = vmul.f32 %v28_v6, %v28_v6 }
  0xa0   :  { %v31_v9 = vadd.f32 %v30_v8, %v29_v7 }
  0xa2   :  { %32 = vadd.xlane.f32.xlu0 %v31_v9 }
 0x12b   :  { %v33_v10 = vpop.xlane.xlu0 %32 }
 0x12c   :  { %v34_v11 = vmul.f32 0.003921569, %v33_v10 }
 0x12e   :  { %v35_v12 = vadd.f32 1e-05, %v34_v11 }
 0x130   :  { %v36_v13 = vmul.f32 8.0, %v35_v12 }
 0x132   :  { %78 = vrcp.f32 %v36_v13 }
 0x13f   :  { %v79_v14 = vpop.eup %78 }
 0x140   :  { %v39_v15 = vmul.f32 %v79_v14, %v29_v7  ;;  %v40_v16 = vmul.f32 %v79_v14, %v30_v8 }
 0x142   :  { %v41_v17 = vadd.f32 0.6, %v39_v15  ;;  %v42_v18 = vadd.f32 0.6, %v40_v16 }
 0x144   :  { %v74_v19 = vmul.f32 -1.442695, %v41_v17  ;;  %v75_v20 = vmul.f32 -1.442695, %v42_v18 }
 0x146   :  { %80 = vpow2.f32 %v74_v19 }
 0x147   :  { %82 = vpow2.f32 %v75_v20 }
 0x153   :  { %v81_v21 = vpop.eup %80 }
 0x154   :  { %v83_v22 = vpop.eup %82  ;;  %v49_v23 = vadd.f32 1.0, %v81_v21 }
 0x155   :  { %v50_v24 = vadd.f32 1.0, %v83_v22 }
 0x156   :  { %84 = vrcp.f32 %v49_v23 }
 0x157   :  { %86 = vrcp.f32 %v50_v24 }
 0x163   :  { %v85_v25 = vpop.eup %84 }
 0x164   :  { %v87_v26 = vpop.eup %86  ;;  %v55_v27 = vmul.f32 %v85_v25, %v21_v0 }
 0x165   :  { %v56_v28 = vmul.f32 %v87_v26, %v22_v1 }
 0x166   :  { %57 = vst [vmem:[#allocation5] sm:$0xff] %v55_v27 }
 0x167   :  { %58 = vst [vmem:[#allocation5 + $0x8] sm:$0xff] %v56_v28 }
 0x168   :  { %119 = shalt.err (!%p116_p9)
}
 0x169   :  { %68 = dma.vmem_to_hbm [thread:$0]  %s66_s11, 256, %s151_s1, [#allocation4]  }
 0x16a   :  { %130 = dma.done.wait [#allocation4], 256  }
 0x16b   :  { %131 = vsyncadd [#allocation4], 4294967040 }
 0x16c   :  { %72 = vsyncpa [#allocation3], 1 }
 0x16d   :  { %73 = vsyncpa [#allocation4], 1 }

</bundles_post_ra>
